<compile_context>
chip_gen: v7x
topology: tpu7x:2x2x1
jax: 0.10.0
libtpu: 0.0.40
codegen_flags: <defaults>
</compile_context>

<pallas_src>
import jax
import jax.numpy as jnp
from jax.experimental import pallas as pl
from jax.experimental.pallas import tpu as pltpu


def _round_up(n, m):
    return ((n + m - 1) // m) * m


def _cdiv(a, b):
    return (a + b - 1) // b


def _bilstm_cnn_kernel(xT_ref, wgT_ref, bgT_ref, woT_ref, boT_ref, outT_ref):
    xT = xT_ref[...]                                                  # (F, TB)

    # Fused gate matmul: (6H, F) @ (F, TB) -> rows [i_f|i_b|o_f|o_b|g_f|g_b]
    gates = (jnp.dot(wgT_ref[...], xT, preferred_element_type=jnp.float32)
             + bgT_ref[...])                                          # (6H, TB)
    h2 = gates.shape[0] // 3                                          # 2H

    sig = jax.nn.sigmoid(gates[:2 * h2, :])                           # one EUP pass over i|o
    i = sig[:h2, :]                                                   # (2H, TB) = [i_f; i_b]
    o = sig[h2:2 * h2, :]                                             # (2H, TB) = [o_f; o_b]
    g = jnp.tanh(gates[2 * h2:, :])                                   # (2H, TB) = [g_f; g_b]
    h = o * jnp.tanh(i * g)                                           # (2H, TB) = [h_fwd; h_bwd]

    # Pre-composed conv-center-tap + pool-folded FC: (C_pad8, 2H) @ (2H, TB)
    outT_ref[...] = (jnp.dot(woT_ref[...], h, preferred_element_type=jnp.float32)
                     + boT_ref[...])


def init_params(key, input_features, num_classes, hidden_size):
    ks = jax.random.split(key, 12)
    bound = 1.0 / jnp.sqrt(jnp.float32(hidden_size))

    def u(k, shape):
        return jax.random.uniform(k, shape, jnp.float32, -bound, bound)

    return dict(
        w_ih_f=u(ks[0], (4 * hidden_size, input_features)),
        w_hh_f=u(ks[1], (4 * hidden_size, hidden_size)),
        b_ih_f=u(ks[2], (4 * hidden_size,)),
        b_hh_f=u(ks[3], (4 * hidden_size,)),
        w_ih_b=u(ks[4], (4 * hidden_size, input_features)),
        w_hh_b=u(ks[5], (4 * hidden_size, hidden_size)),
        b_ih_b=u(ks[6], (4 * hidden_size,)),
        b_hh_b=u(ks[7], (4 * hidden_size,)),
        w_conv=u(ks[8], (64, 2 * hidden_size, 3)),   # Conv1d weight (out, in, k)
        b_conv=u(ks[9], (64,)),
        w_fc=u(ks[10], (num_classes, 128)),          # Linear(128, num_classes)
        b_fc=u(ks[11], (num_classes,)),
    )


def bilstm_cnn_forward(x, params):
    B, F = x.shape
    H = params["w_hh_f"].shape[1]
    C = params["w_fc"].shape[0]

    # ---------- wrapper-side algebra (exact up to fp reassociation) ----------
    # PyTorch gate row order in w_ih is [i, f, g, o]; h0 = c0 = 0 so the forget
    # gate is dead and gates reduce to x @ w_ih.T + b_ih + b_hh.
    def gate_parts(w_ih, b_ih, b_hh):
        b = (b_ih + b_hh)[:, None]                              # (4H, 1)
        return ((w_ih[0:H], w_ih[3 * H:4 * H], w_ih[2 * H:3 * H]),   # i, o, g rows
                (b[0:H], b[3 * H:4 * H], b[2 * H:3 * H]))

    (wi_f, wo_f, wg_f), (bi_f, bo_f, bg_f) = gate_parts(
        params["w_ih_f"], params["b_ih_f"], params["b_hh_f"])
    (wi_b, wo_b, wg_b), (bi_b, bo_b, bg_b) = gate_parts(
        params["w_ih_b"], params["b_ih_b"], params["b_hh_b"])

    # Row order [i_f | i_b | o_f | o_b | g_f | g_b] -> one sigmoid over 4H rows.
    wg_T = jnp.concatenate([wi_f, wi_b, wo_f, wo_b, wg_f, wg_b], axis=0)  # (6H, F)
    bg_T = jnp.concatenate([bi_f, bi_b, bo_f, bo_b, bg_f, bg_b], axis=0)  # (6H, 1)

    # Conv1d(k=3, pad=1) on a length-1 sequence -> center tap only.
    # MaxPool1d(k=2, s=1, p=1) on length 1 -> duplicate each channel; flatten
    # interleaves -> fold into FC by summing even/odd columns; then pre-compose
    # conv @ FC (no nonlinearity in between in the original forward).
    wc_center = params["w_conv"][:, :, 1]                        # (64, 2H)
    wfc_fold = params["w_fc"][:, 0::2] + params["w_fc"][:, 1::2]  # (C, 64)
    w_out_T = wfc_fold @ wc_center                               # (C, 2H)
    b_out_T = wfc_fold @ params["b_conv"][:, None] + params["b_fc"][:, None]  # (C, 1)

    # Pad C only to 8 sublanes (not 128 lanes).
    C_pad = _round_up(C, 8)
    w_out_T = jnp.pad(w_out_T, ((0, C_pad - C), (0, 0)))
    b_out_T = jnp.pad(b_out_T, ((0, C_pad - C), (0, 0)))

    # ---------- batch tiling: lane-dense tiles, >= 2 grid steps when possible ----------
    LANE = 128
    TB_CAP = 512
    B_lane = _round_up(B, LANE)
    if B_lane >= 2 * LANE:
        n_tiles = max(2, _cdiv(B_lane, TB_CAP))      # keep both v7x TCs busy
        TB = _round_up(_cdiv(B_lane, n_tiles), LANE)
    else:
        TB = LANE
    B_pad = _round_up(B_lane, TB)
    grid = (B_pad // TB,)

    xT_pad = jnp.pad(x.T, ((0, 0), (0, B_pad - B)))              # (F, B_pad), feature-major

    def resident(shape):
        # Constant index_map -> stays resident in VMEM across grid steps.
        return pl.BlockSpec(shape, lambda i: (0, 0))

    flops = 2 * B_pad * F * (6 * H) + 2 * B_pad * (2 * H) * C_pad
    transcendentals = 4 * B_pad * (2 * H)
    bytes_accessed = 4 * (xT_pad.size + wg_T.size + bg_T.size
                          + w_out_T.size + b_out_T.size + C_pad * B_pad)

    outT = pl.pallas_call(
        _bilstm_cnn_kernel,
        out_shape=jax.ShapeDtypeStruct((C_pad, B_pad), jnp.float32),
        grid=grid,
        in_specs=[
            pl.BlockSpec((F, TB), lambda i: (0, i)),             # x tile (feature-major)
            resident(wg_T.shape),                                # (6H, F)
            resident(bg_T.shape),                                # (6H, 1)
            resident(w_out_T.shape),                             # (C_pad, 2H)
            resident(b_out_T.shape),                             # (C_pad, 1)
        ],
        out_specs=pl.BlockSpec((C_pad, TB), lambda i: (0, i)),
        compiler_params=pltpu.CompilerParams(
            dimension_semantics=("parallel",)),                  # shards tiles on v7x dual-TC
        cost_estimate=pl.CostEstimate(flops=flops,
                                      transcendentals=transcendentals,
                                      bytes_accessed=bytes_accessed),
    )(xT_pad, wg_T, bg_T, w_out_T, b_out_T)

    return outT[:C, :B].T                                        # (B, C)


def reference_forward(x, p):
    """Pure-JAX mirror of the PyTorch forward (seq_len == 1)."""
    def lstm_dir(w_ih, b_ih, b_hh, hsz):
        gates = x @ w_ih.T + b_ih + b_hh            # h0 = c0 = 0
        i = jax.nn.sigmoid(gates[:, 0 * hsz:1 * hsz])
        g = jnp.tanh(gates[:, 2 * hsz:3 * hsz])
        o = jax.nn.sigmoid(gates[:, 3 * hsz:4 * hsz])
        return o * jnp.tanh(i * g)

    hsz = p["w_hh_f"].shape[1]
    h = jnp.concatenate([lstm_dir(p["w_ih_f"], p["b_ih_f"], p["b_hh_f"], hsz),
                         lstm_dir(p["w_ih_b"], p["b_ih_b"], p["b_hh_b"], hsz)], axis=-1)
    # Conv1d(k=3, pad=1) on a length-1 sequence -> center tap only
    y = h @ p["w_conv"][:, :, 1].T + p["b_conv"]                 # (B, 64)
    # MaxPool1d(k=2, s=1, p=1) on length 1 -> duplicate each channel; flatten
    flat = jnp.repeat(y, 2, axis=1)                              # (B, 128)
    return flat @ p["w_fc"].T + p["b_fc"]


if __name__ == "__main__":
    B, F, H, C = 2, 16, 32, 4
    key = jax.random.PRNGKey(0)
    k_x, k_p = jax.random.split(key)

    x = jax.random.normal(k_x, (B, F), dtype=jnp.float32)
    params = init_params(k_p, input_features=F, num_classes=C, hidden_size=H)

    out = jax.block_until_ready(bilstm_cnn_forward(x, params))
    ref = reference_forward(x, params)

    assert out.shape == (B, C), out.shape
    assert jnp.allclose(out, ref, atol=1e-4, rtol=1e-4), (out, ref)
    print("KERNEL_OK")
</pallas_src>

<mosaic_0001>
module attributes {stable_mosaic.version = 11 : i64} {
  func.func @_bilstm_cnn_kernel(%arg0: i32, %arg1: memref<16x128xf32, #tpu.memory_space<vmem>>, %arg2: memref<192x16xf32, #tpu.memory_space<vmem>>, %arg3: memref<192x1xf32, #tpu.memory_space<vmem>>, %arg4: memref<8x64xf32, #tpu.memory_space<vmem>>, %arg5: memref<8x1xf32, #tpu.memory_space<vmem>>, %arg6: memref<8x128xf32, #tpu.memory_space<vmem>>) attributes {dimension_semantics = [#tpu.dimension_semantics<parallel>], iteration_bounds = array<i64: 1>, scalar_prefetch = 0 : i64, scratch_operands = 0 : i64, tpu.core_type = #tpu.core_type<tc>, window_params = [{transform_indices = @transform_0, window_bounds = array<i64: 16, 128>}, {pipeline_mode = #tpu.pipeline_mode<synchronous>, transform_indices = @transform_1, window_bounds = array<i64: 192, 16>}, {pipeline_mode = #tpu.pipeline_mode<synchronous>, transform_indices = @transform_2, window_bounds = array<i64: 192, 1>}, {pipeline_mode = #tpu.pipeline_mode<synchronous>, transform_indices = @transform_3, window_bounds = array<i64: 8, 64>}, {pipeline_mode = #tpu.pipeline_mode<synchronous>, transform_indices = @transform_4, window_bounds = array<i64: 8, 1>}, {transform_indices = @transform_5, window_bounds = array<i64: 8, 128>}]} {
    %c0 = arith.constant 0 : index
    %c0_0 = arith.constant 0 : index
    %0 = vector.load %arg1[%c0, %c0_0] : memref<16x128xf32, #tpu.memory_space<vmem>>, vector<16x128xf32>
    %c0_1 = arith.constant 0 : index
    %c0_2 = arith.constant 0 : index
    %1 = vector.load %arg2[%c0_1, %c0_2] : memref<192x16xf32, #tpu.memory_space<vmem>>, vector<192x16xf32>
    %cst = arith.constant dense<0.000000e+00> : vector<192x128xf32>
    %2 = tpu.matmul %1, %0, %cst {dimension_numbers = #tpu.dot_dimension_numbers<[1], [0], [0], [1], [0, 0, 1, 1], [], []>} : vector<192x16xf32>, vector<16x128xf32>, vector<192x128xf32> -> vector<192x128xf32>
    %c0_3 = arith.constant 0 : index
    %c0_4 = arith.constant 0 : index
    %3 = vector.load %arg3[%c0_3, %c0_4] : memref<192x1xf32, #tpu.memory_space<vmem>>, vector<192x1xf32>
    %4 = vector.broadcast %3 : vector<192x1xf32> to vector<192x128xf32>
    %5 = arith.addf %2, %4 : vector<192x128xf32>
    %6 = vector.extract_strided_slice %5 {offsets = [0, 0], sizes = [128, 128], strides = [1, 1]} : vector<192x128xf32> to vector<128x128xf32>
    %7 = arith.negf %6 : vector<128x128xf32>
    %8 = math.exp %7 : vector<128x128xf32>
    %cst_5 = arith.constant 1.000000e+00 : f32
    %9 = vector.broadcast %cst_5 : f32 to vector<128x128xf32>
    %10 = arith.addf %9, %8 : vector<128x128xf32>
    %11 = arith.divf %9, %10 : vector<128x128xf32>
    %12 = vector.extract_strided_slice %11 {offsets = [0, 0], sizes = [64, 128], strides = [1, 1]} : vector<128x128xf32> to vector<64x128xf32>
    %13 = vector.extract_strided_slice %11 {offsets = [64, 0], sizes = [64, 128], strides = [1, 1]} : vector<128x128xf32> to vector<64x128xf32>
    %14 = vector.extract_strided_slice %5 {offsets = [128, 0], sizes = [64, 128], strides = [1, 1]} : vector<192x128xf32> to vector<64x128xf32>
    %15 = math.tanh %14 : vector<64x128xf32>
    %16 = arith.mulf %12, %15 : vector<64x128xf32>
    %17 = math.tanh %16 : vector<64x128xf32>
    %18 = arith.mulf %13, %17 : vector<64x128xf32>
    %c0_6 = arith.constant 0 : index
    %c0_7 = arith.constant 0 : index
    %19 = vector.load %arg4[%c0_6, %c0_7] : memref<8x64xf32, #tpu.memory_space<vmem>>, vector<8x64xf32>
    %cst_8 = arith.constant dense<0.000000e+00> : vector<8x128xf32>
    %20 = tpu.matmul %19, %18, %cst_8 {dimension_numbers = #tpu.dot_dimension_numbers<[1], [0], [0], [1], [0, 0, 1, 1], [], []>} : vector<8x64xf32>, vector<64x128xf32>, vector<8x128xf32> -> vector<8x128xf32>
    %c0_9 = arith.constant 0 : index
    %c0_10 = arith.constant 0 : index
    %21 = vector.load %arg5[%c0_9, %c0_10] : memref<8x1xf32, #tpu.memory_space<vmem>>, vector<8x1xf32>
    %22 = vector.broadcast %21 : vector<8x1xf32> to vector<8x128xf32>
    %23 = arith.addf %20, %22 : vector<8x128xf32>
    %c0_11 = arith.constant 0 : index
    %c0_12 = arith.constant 0 : index
    %24 = vector.load %arg6[%c0_11, %c0_12] : memref<8x128xf32, #tpu.memory_space<vmem>>, vector<8x128xf32>
    tpu.vector_store %arg6[%c0_11, %c0_12], %23 {strides = array<i32>} : memref<8x128xf32, #tpu.memory_space<vmem>>, vector<8x128xf32>,
    return
  }
  func.func @transform_0(%arg0: i32) -> (i32, i32) {
    %c0_i32 = arith.constant 0 : i32
    %c0_i32_0 = arith.constant 0 : i32
    return %c0_i32, %arg0 : i32, i32
  }
  func.func @transform_1(%arg0: i32) -> (i32, i32) {
    %c0_i32 = arith.constant 0 : i32
    %c0_i32_0 = arith.constant 0 : i32
    %c0_i32_1 = arith.constant 0 : i32
    return %c0_i32, %c0_i32_0 : i32, i32
  }
  func.func @transform_2(%arg0: i32) -> (i32, i32) {
    %c0_i32 = arith.constant 0 : i32
    %c0_i32_0 = arith.constant 0 : i32
    %c0_i32_1 = arith.constant 0 : i32
    return %c0_i32, %c0_i32_0 : i32, i32
  }
  func.func @transform_3(%arg0: i32) -> (i32, i32) {
    %c0_i32 = arith.constant 0 : i32
    %c0_i32_0 = arith.constant 0 : i32
    %c0_i32_1 = arith.constant 0 : i32
    return %c0_i32, %c0_i32_0 : i32, i32
  }
  func.func @transform_4(%arg0: i32) -> (i32, i32) {
    %c0_i32 = arith.constant 0 : i32
    %c0_i32_0 = arith.constant 0 : i32
    %c0_i32_1 = arith.constant 0 : i32
    return %c0_i32, %c0_i32_0 : i32, i32
  }
  func.func @transform_5(%arg0: i32) -> (i32, i32) {
    %c0_i32 = arith.constant 0 : i32
    %c0_i32_0 = arith.constant 0 : i32
    return %c0_i32, %arg0 : i32, i32
  }
}

</mosaic_0001>

<bundles_post_ra>
// kernel: tpu_custom_call.1
= control target key start
LH: loop header
LB: loop body
LE: loop exit
PB: predicated region body
PF: predicated region fallthrough
CT: control target
= control target key end

     0   :  { %vm191_vm0 = vcmask 130048   ;;  %v953_v5 = vmov 0   ;;  %s1208_s0 = inlined_call_operand.vmem [shape: f32[16,128], index: 0, kind: input, shape index: {}]   ;;  %s1209_s1 = inlined_call_operand.vmem [shape: f32[192,16], index: 1, kind: input, shape index: {}]   ;;  %s1210_s2 = inlined_call_operand.vmem [shape: f32[192,1], index: 2, kind: input, shape index: {}]   ;;  %s1211_s3 = inlined_call_operand.vmem [shape: f32[8,64], index: 3, kind: input, shape index: {}]   ;;  %s1212_s4 = inlined_call_operand.vmem [shape: f32[8,1], index: 4, kind: input, shape index: {}]   ;;  %s1213_s5 = inlined_call_operand.hbm [shape: f32[8,128], index: 5, kind: output, shape index: {}]  }
   0x1   :  { %v21_v0 = vld [vmem:[%s1208_s0] sm:$0xff]  ;;  %v22_v1 = vld [vmem:[%s1208_s0 + $0x8] sm:$0xff]  ;;  %v37_v4 = vld [vmem:[%s1209_s1 + $0x70] sm:$0xff]  ;;  %831 = vset.pattern.permute.xlu0 %v953_v5  ;;  %832 = vset.pattern.permute.xlu1 %v953_v5 }
   0x2   :  { %v23_v2 = vld [vmem:[%s1209_s1] sm:$0xff]  ;;  %v808_v3 = vpack.c.bf16 %v22_v1, %v21_v0  ;;  %774 = vmatprep.mubr.msk.f32.mxu1 %vm191_vm0, %v37_v4  ;;  %v24_v6 = vld [vmem:[%s1209_s1 + $0x8] sm:$0xff]  ;;  %v38_v7 = vld [vmem:[%s1209_s1 + $0x78] sm:$0xff] }
   0x3   :  { %753 = vmatprep.mubr.msk.f32.mxu0 %vm191_vm0, %v23_v2  ;;  %v25_v8 = vld [vmem:[%s1209_s1 + $0x10] sm:$0xff]  ;;  %v39_v9 = vld [vmem:[%s1209_s1 + $0x80] sm:$0xff]  ;;  %v26_v10 = vld [vmem:[%s1209_s1 + $0x18] sm:$0xff] }
   0x4   :  { %809 = vmatprep.subr.bf16.mxu0 %v808_v3  ;;  %824 = vmatprep.subr.bf16.mxu1 %v808_v3  ;;  %v40_v11 = vld [vmem:[%s1209_s1 + $0x88] sm:$0xff]  ;;  %v47_v12 = vld [vmem:[%s1210_s2] sm:$0xff]  ;;  %v41_v14 = vld [vmem:[%s1209_s1 + $0x90] sm:$0xff] }
   0x5   :  { %811 = vmatpush3.bf16.msra.mxu0 %v808_v3  ;;  %825 = vmatpush3.bf16.msra.mxu1 %v808_v3  ;;  %v27_v13 = vld [vmem:[%s1209_s1 + $0x20] sm:$0xff]  ;;  %v49_v15 = vld [vmem:[%s1210_s2 + $0x10] sm:$0xff]  ;;  %v48_v16 = vld [vmem:[%s1210_s2 + $0x8] sm:$0xff] }
   0x6   :  { %73 = vperm.xlu0 %831, %v47_v12   ;;  %83 = vperm.xlu1 %832, %v49_v15   ;;  %v50_v17 = vld [vmem:[%s1210_s2 + $0x18] sm:$0xff]  ;;  %v28_v18 = vld [vmem:[%s1209_s1 + $0x28] sm:$0xff]  ;;  %v29_v20 = vld [vmem:[%s1209_s1 + $0x30] sm:$0xff] }
   0x7   :  { %v42_v19 = vld [vmem:[%s1209_s1 + $0x98] sm:$0xff]  ;;  %v43_v21 = vld [vmem:[%s1209_s1 + $0xa0] sm:$0xff]  ;;  %v52_v23 = vld [vmem:[%s1210_s2 + $0x28] sm:$0xff] }
   0x8   :  { %754 = vmatmul.mubr.msk.f32.vlgmr.msra.gmra.mrb[0].mxu0 %vm191_vm0, %v24_v6  ;;  %775 = vmatmul.mubr.msk.f32.vlgmr.msra.gmra.mrb[0].mxu1 %vm191_vm0, %v38_v7  ;;  %v51_v22 = vld [vmem:[%s1210_s2 + $0x20] sm:$0xff]  ;;  %v30_v24 = vld [vmem:[%s1209_s1 + $0x38] sm:$0xff]  ;;  %v44_v25 = vld [vmem:[%s1209_s1 + $0xa8] sm:$0xff] }
   0x9   :  { %756 = vmatprep.mubr.msk.f32.mxu0 %vm191_vm0, %v25_v8  ;;  %777 = vmatprep.mubr.msk.f32.mxu1 %vm191_vm0, %v39_v9  ;;  %v31_v26 = vld [vmem:[%s1209_s1 + $0x40] sm:$0xff]  ;;  %v45_v27 = vld [vmem:[%s1209_s1 + $0xb0] sm:$0xff] }
   0xa   :  { %78 = vperm.xlu0 %831, %v48_v16   ;;  %88 = vperm.xlu1 %832, %v50_v17  }
   0xc   :  { %757 = vmatmul.mubr.msk.f32.gmra.mrb[2].mxu0 %vm191_vm0, %v26_v10  ;;  %778 = vmatmul.mubr.msk.f32.gmra.mrb[2].mxu1 %vm191_vm0, %v40_v11 }
   0xd   :  { %759 = vmatprep.mubr.msk.f32.mxu0 %vm191_vm0, %v27_v13  ;;  %780 = vmatprep.mubr.msk.f32.mxu1 %vm191_vm0, %v41_v14 }
   0xe   :  { %93 = vperm.xlu0 %831, %v51_v22  }
  0x10   :  { %760 = vmatmul.mubr.msk.f32.gmra.mrb[4].mxu0 %vm191_vm0, %v28_v18  ;;  %781 = vmatmul.mubr.msk.f32.gmra.mrb[4].mxu1 %vm191_vm0, %v42_v19 }
  0x11   :  { %762 = vmatprep.mubr.msk.f32.mxu0 %vm191_vm0, %v29_v20  ;;  %783 = vmatprep.mubr.msk.f32.mxu1 %vm191_vm0, %v43_v21 }
  0x12   :  { %10 = vsyncpa [#allocation3], 0  ;;  %98 = vperm.xlu1 %832, %v52_v23   ;;  %v53_v28 = vld [vmem:[%s1210_s2 + $0x30] sm:$0xff]  ;;  %v54_v29 = vld [vmem:[%s1210_s2 + $0x38] sm:$0xff]  ;;  %v954_v53 = vmov 0.0|0.0   ;;  %vm955_vm1 = vmmov 0  }
  0x13   :  { %v32_v30 = vld [vmem:[%s1209_s1 + $0x48] sm:$0xff]  ;;  %v46_v31 = vld [vmem:[%s1209_s1 + $0xb8] sm:$0xff]  ;;  %v33_v32 = vld [vmem:[%s1209_s1 + $0x50] sm:$0xff]  ;;  %103 = vperm.xlu0 %831, %v53_v28   ;;  %812 = vmatprep.subr.bf16.mxu1 %v954_v53  ;;  %v956_v56 = vmov 0.0   ;;  %vm584_vm2 = vcmask 523264   ;;  %s957_s15 = smov [#allocation2]  }
  0x14   :  { %763 = vmatmul.mubr.msk.f32.gmra.mrb[6].mxu0 %vm191_vm0, %v30_v24  ;;  %784 = vmatmul.mubr.msk.f32.gmra.mrb[6].mxu1 %vm191_vm0, %v44_v25  ;;  %v55_v33 = vld [vmem:[%s1210_s2 + $0x40] sm:$0xff]  ;;  %v56_v34 = vld [vmem:[%s1210_s2 + $0x48] sm:$0xff]  ;;  %v34_v35 = vld [vmem:[%s1209_s1 + $0x58] sm:$0xff]  ;;  %s665_s16 = sshll.u32 %s957_s15, 4  ;;  %s666_s16 = int_to_ptr.vmem [resolvable:$true] %s665_s16 }
  0x15   :  { %765 = vmatprep.mubr.msk.f32.mxu0 %vm191_vm0, %v31_v26  ;;  %786 = vmatprep.mubr.msk.f32.mxu1 %vm191_vm0, %v45_v27  ;;  %v35_v36 = vld [vmem:[%s1209_s1 + $0x60] sm:$0xff]  ;;  %v64_v38 = vld [vmem:[%s1210_s2 + $0x88] sm:$0xff]  ;;  %v57_v40 = vld [vmem:[%s1210_s2 + $0x50] sm:$0xff]  ;;  %s929_s17 = scalar_lea.vmem %s666_s16, 128  ;;  %p934_p1 = scmp.lt.s32.totalorder %s666_s16, %s666_s16 }
  0x16   :  { %108 = vperm.xlu1 %832, %v54_v29   ;;  %v63_v37 = vld [vmem:[%s1210_s2 + $0x80] sm:$0xff]  ;;  %v36_v39 = vld [vmem:[%s1209_s1 + $0x68] sm:$0xff]  ;;  %v58_v41 = vld [vmem:[%s1210_s2 + $0x58] sm:$0xff]  ;;  %p930_p0 = scmp.ne.s32.totalorder %s666_s16, %s929_s17  ;;  %p935_p2 = scmp.lt.s32.totalorder %s929_s17, %s929_s17 }
  0x17   :  { %113 = vperm.xlu0 %831, %v55_v33   ;;  %v65_v42 = vld [vmem:[%s1210_s2 + $0x90] sm:$0xff]  ;;  %v66_v43 = vld [vmem:[%s1210_s2 + $0x98] sm:$0xff]  ;;  %v59_v44 = vld [vmem:[%s1210_s2 + $0x60] sm:$0xff] }
  0x18   :  { %766 = vmatmul.mubr.msk.f32.gmra.mrb[8].mxu0 %vm191_vm0, %v32_v30  ;;  %787 = vmatmul.mubr.msk.f32.gmra.mrb[8].mxu1 %vm191_vm0, %v46_v31  ;;  %v60_v45 = vld [vmem:[%s1210_s2 + $0x68] sm:$0xff]  ;;  %v67_v46 = vld [vmem:[%s1210_s2 + $0xa0] sm:$0xff]  ;;  %v61_v48 = vld [vmem:[%s1210_s2 + $0x70] sm:$0xff]  ;;  %p936_p3 = por %p935_p2, %p934_p1 }
  0x19   :  { %768 = vmatprep.mubr.msk.f32.mxu0 %vm191_vm0, %v33_v32  ;;  %v68_v47 = vld [vmem:[%s1210_s2 + $0xa8] sm:$0xff]  ;;  %v62_v49 = vld [vmem:[%s1210_s2 + $0x78] sm:$0xff]  ;;  %v69_v50 = vld [vmem:[%s1210_s2 + $0xb0] sm:$0xff]  ;;  %805 = vmatprep.mubr.msk.f32.mxu1 %vm955_vm1, %v956_v56 }
  0x1a   :  { %118 = vperm.xlu1 %832, %v56_v34   ;;  %v70_v51 = vld [vmem:[%s1210_s2 + $0xb8] sm:$0xff]  ;;  %v578_v52 = vld [vmem:[%s1212_s4] sm:$0xff]  ;;  %p937_p4 = pnand %p936_p3, %p930_p0 }
  0x1b   :  { %153 = vperm.xlu0 %831, %v63_v37  }
  0x1c   :  { %769 = vmatmul.mubr.msk.f32.gmra.mrb[10].mxu0 %vm191_vm0, %v34_v35 }
  0x1d   :  { %771 = vmatprep.mubr.msk.f32.mxu0 %vm191_vm0, %v35_v36 }
  0x1e   :  { %158 = vperm.xlu1 %832, %v64_v38  }
  0x1f   :  { %123 = vperm.xlu0 %831, %v57_v40  }
  0x20   :  { %772 = vmatmul.mubr.msk.f32.gmra.mrb[12].mxu0 %vm191_vm0, %v36_v39 }
  0x22   :  { %128 = vperm.xlu1 %832, %v58_v41  }
  0x23   :  { %163 = vperm.xlu0 %831, %v65_v42  }
  0x26   :  { %168 = vperm.xlu1 %832, %v66_v43  }
  0x27   :  { %133 = vperm.xlu0 %831, %v59_v44  }
  0x2a   :  { %138 = vperm.xlu1 %832, %v60_v45  }
  0x2b   :  { %173 = vperm.xlu0 %831, %v67_v46  }
  0x2e   :  { %178 = vperm.xlu1 %832, %v68_v47  }
  0x2f   :  { %143 = vperm.xlu0 %831, %v61_v48  }
  0x32   :  { %148 = vperm.xlu1 %832, %v62_v49  }
  0x33   :  { %183 = vperm.xlu0 %831, %v69_v50  }
  0x36   :  { %188 = vperm.xlu1 %832, %v70_v51  }
  0x37   :  { %581 = vperm.xlu0 %831, %v578_v52  }
  0x85   :  { %v84_v54 = vpop.permute.xlu1 %83  ;;  %v74_v58 = vpop.permute.xlu0 %73 }
  0x89   :  { %v89_v55 = vpop.permute.xlu1 %88  ;;  %v79_v60 = vpop.permute.xlu0 %78 }
  0x8d   :  { %v94_v62 = vpop.permute.xlu0 %93 }
  0x91   :  { %v99_v57 = vpop.permute.xlu1 %98 }
  0x92   :  { %v104_v0 = vpop.permute.xlu0 %103 }
  0x95   :  { %v109_v59 = vpop.permute.xlu1 %108 }
  0x96   :  { %v1170_v2 = vpop.permute.xlu0 %113 }
  0x99   :  { %v1166_v61 = vpop.permute.xlu1 %118 }
  0x9a   :  { %v154_v4 = vpop.permute.xlu0 %153 }
  0x9d   :  { %v159_v63 = vpop.permute.xlu1 %158 }
  0x9e   :  { %v1174_v6 = vpop.permute.xlu0 %123 }
  0xa1   :  { %v1168_v1 = vpop.permute.xlu1 %128 }
  0xa2   :  { %v164_v14 = vpop.permute.xlu0 %163 }
  0xa5   :  { %v169_v3 = vpop.permute.xlu1 %168 }
  0xa6   :  { %v1180_v35 = vpop.permute.xlu0 %133 }
  0xa9   :  { %v1172_v5 = vpop.permute.xlu1 %138 }
  0xaa   :  { %v174_v56 = vpop.permute.xlu0 %173 }
  0xad   :  { %v1176_v7 = vpop.permute.xlu1 %178 }
  0xb1   :  { %v149_v15 = vpop.permute.xlu1 %148 }
  0xdb   :  { %v755_v8 = vpop.f32.mrb[0].mxu0  ;;  %v776_v9 = vpop.f32.mrb[0].mxu1 }
  0xdc   :  { %v336_v10 = vadd.f32 %v755_v8, %v79_v60  ;;  %v330_v11 = vpop.f32.mrb[1].mxu0  ;;  %v1178_v12 = vpop.f32.mrb[1].mxu1  ;;  %v406_v17 = vadd.f32 %v776_v9, %v149_v15 }
  0xdd   :  { %v331_v13 = vadd.f32 %v330_v11, %v74_v58 }
  0xde   :  { %v698_v16 = vmul.f32 -1.442695, %v336_v10  ;;  %v712_v26 = vmul.f32 -1.442695, %v406_v17 }
  0xdf   :  { %v697_v18 = vmul.f32 -1.442695, %v331_v13  ;;  %v758_v19 = vpop.f32.mrb[2].mxu0  ;;  %v779_v20 = vpop.f32.mrb[2].mxu1 }
  0xe0   :  { %833 = vpow2.f32 %v698_v16  ;;  %v346_v21 = vadd.f32 %v758_v19, %v89_v55  ;;  %v340_v22 = vpop.f32.mrb[3].mxu0  ;;  %v410_v23 = vpop.f32.mrb[3].mxu1  ;;  %v416_v33 = vadd.f32 %v779_v20, %v159_v63 }
  0xe1   :  { %v341_v24 = vadd.f32 %v340_v22, %v84_v54  ;;  %835 = vpow2.f32 %v697_v18  ;;  %v411_v37 = vadd.f32 %v410_v23, %v154_v4  ;;  %v189_v23 = vpop.permute.xlu1 %188 }
  0xe2   :  { %v700_v25 = vmul.f32 -1.442695, %v346_v21 }
  0xe3   :  { %v699_v27 = vmul.f32 -1.442695, %v341_v24  ;;  %v761_v28 = vpop.f32.mrb[4].mxu0  ;;  %v782_v29 = vpop.f32.mrb[4].mxu1 }
  0xe4   :  { %837 = vpow2.f32 %v700_v25  ;;  %v356_v30 = vadd.f32 %v761_v28, %v99_v57  ;;  %v350_v31 = vpop.f32.mrb[5].mxu0  ;;  %v420_v32 = vpop.f32.mrb[5].mxu1  ;;  %v426_v45 = vadd.f32 %v782_v29, %v169_v3 }
  0xe5   :  { %v351_v34 = vadd.f32 %v350_v31, %v94_v62  ;;  %839 = vpow2.f32 %v699_v27  ;;  %v421_v51 = vadd.f32 %v420_v32, %v164_v14  ;;  %v144_v14 = vpop.permute.xlu0 %143 }
  0xe6   :  { %v702_v36 = vmul.f32 -1.442695, %v356_v30  ;;  %841 = vpow2.f32 %v712_v26  ;;  %v401_v17 = vadd.f32 %v1178_v12, %v144_v14 }
  0xe7   :  { %v701_v38 = vmul.f32 -1.442695, %v351_v34  ;;  %v764_v39 = vpop.f32.mrb[6].mxu0  ;;  %v785_v40 = vpop.f32.mrb[6].mxu1 }
  0xe8   :  { %843 = vpow2.f32 %v702_v36  ;;  %v366_v41 = vadd.f32 %v764_v39, %v109_v59  ;;  %v360_v42 = vpop.f32.mrb[7].mxu0  ;;  %v430_v43 = vpop.f32.mrb[7].mxu1  ;;  %v436_v59 = vadd.f32 %v785_v40, %v1176_v7  ;;  %v711_v28 = vmul.f32 -1.442695, %v401_v17 }
  0xe9   :  { %845 = vtanh.f32 %v416_v33  ;;  %v361_v52 = vadd.f32 %v360_v42, %v104_v0  ;;  %v431_v11 = vadd.f32 %v430_v43, %v174_v56  ;;  %v184_v34 = vpop.permute.xlu0 %183 }
  0xea   :  { %v834_v44 = vpop.eup %833  ;;  %847 = vpow2.f32 %v701_v38  ;;  %v704_v46 = vmul.f32 -1.442695, %v366_v41 }
  0xeb   :  { %v498_v47 = vadd.f32 1.0, %v834_v44  ;;  %849 = vtanh.f32 %v411_v37  ;;  %v767_v48 = vpop.f32.mrb[8].mxu0  ;;  %v788_v49 = vpop.f32.mrb[8].mxu1  ;;  %v703_v3 = vmul.f32 -1.442695, %v361_v52 }
  0xec   :  { %v836_v50 = vpop.eup %835  ;;  %851 = vpow2.f32 %v704_v46  ;;  %v370_v54 = vpop.f32.mrb[9].mxu0  ;;  %v376_v4 = vadd.f32 %v767_v48, %v1166_v61  ;;  %v446_v26 = vadd.f32 %v788_v49, %v189_v23 }
  0xed   :  { %v440_v55 = vpop.f32.mrb[9].mxu1  ;;  %853 = vrcp.f32 %v498_v47  ;;  %v497_v57 = vadd.f32 1.0, %v836_v50  ;;  %v371_v21 = vadd.f32 %v370_v54, %v1170_v2 }
  0xee   :  { %v838_v58 = vpop.eup %837  ;;  %855 = vtanh.f32 %v426_v45  ;;  %v706_v18 = vmul.f32 -1.442695, %v376_v4  ;;  %v441_v39 = vadd.f32 %v440_v55, %v184_v34 }
  0xef   :  { %857 = vrcp.f32 %v497_v57  ;;  %v500_v60 = vadd.f32 1.0, %v838_v58  ;;  %v770_v62 = vpop.f32.mrb[10].mxu0  ;;  %v840_v63 = vpop.eup %839  ;;  %v705_v30 = vmul.f32 -1.442695, %v371_v21 }
  0xf0   :  { %859 = vtanh.f32 %v421_v51  ;;  %v380_v8 = vpop.f32.mrb[11].mxu0  ;;  %v842_v9 = vpop.eup %841  ;;  %v499_v0 = vadd.f32 1.0, %v840_v63  ;;  %v386_v2 = vadd.f32 %v770_v62, %v1168_v1 }
  0xf1   :  { %861 = vrcp.f32 %v500_v60  ;;  %v512_v36 = vadd.f32 1.0, %v842_v9  ;;  %v381_v43 = vadd.f32 %v380_v8, %v1174_v6 }
  0xf2   :  { %v844_v10 = vpop.eup %843  ;;  %863 = vtanh.f32 %v436_v59  ;;  %v708_v46 = vmul.f32 -1.442695, %v386_v2 }
  0xf3   :  { %v846_v13 = vpop.eup %845  ;;  %865 = vrcp.f32 %v499_v0  ;;  %v502_v15 = vadd.f32 1.0, %v844_v10  ;;  %v773_v7 = vpop.f32.mrb[12].mxu0  ;;  %v707_v54 = vmul.f32 -1.442695, %v381_v43 }
  0xf4   :  { %v848_v16 = vpop.eup %847  ;;  %867 = vpow2.f32 %v703_v3  ;;  %v390_v19 = vpop.f32.mrb[13].mxu0  ;;  %v396_v47 = vadd.f32 %v773_v7, %v1172_v5 }
  0xf5   :  { %v850_v20 = vpop.eup %849  ;;  %869 = vrcp.f32 %v502_v15  ;;  %v501_v61 = vadd.f32 1.0, %v848_v16  ;;  %v391_v50 = vadd.f32 %v390_v19, %v1180_v35 }
  0xf6   :  { %v852_v22 = vpop.eup %851  ;;  %871 = vtanh.f32 %v431_v11  ;;  %v710_v6 = vmul.f32 -1.442695, %v396_v47 }
  0xf7   :  { %v854_v24 = vpop.eup %853  ;;  %873 = vrcp.f32 %v501_v61  ;;  %v504_v25 = vadd.f32 1.0, %v852_v22  ;;  %v709_v58 = vmul.f32 -1.442695, %v391_v50 }
  0xf8   :  { %v856_v27 = vpop.eup %855  ;;  %v554_v29 = vmul.f32 %v854_v24, %v846_v13  ;;  %875 = vpow2.f32 %v706_v18 }
  0xf9   :  { %v858_v12 = vpop.eup %857  ;;  %877 = vrcp.f32 %v504_v25 }
  0xfa   :  { %v860_v31 = vpop.eup %859  ;;  %v553_v32 = vmul.f32 %v858_v12, %v850_v20  ;;  %879 = vtanh.f32 %v446_v26 }
  0xfb   :  { %v862_v33 = vpop.eup %861  ;;  %881 = vpow2.f32 %v711_v28 }
  0xfc   :  { %v864_v37 = vpop.eup %863  ;;  %v556_v38 = vmul.f32 %v862_v33, %v856_v27  ;;  %883 = vpow2.f32 %v705_v30 }
  0xfd   :  { %v866_v40 = vpop.eup %865  ;;  %885 = vrcp.f32 %v512_v36 }
  0xfe   :  { %v868_v41 = vpop.eup %867  ;;  %v555_v42 = vmul.f32 %v866_v40, %v860_v31  ;;  %887 = vtanh.f32 %v441_v39 }
  0xff   :  { %v870_v44 = vpop.eup %869  ;;  %v503_v45 = vadd.f32 1.0, %v868_v41  ;;  %v577_v41 = vld [vmem:[%s1211_s3] sm:$0xff] }
 0x100   :  { %v872_v48 = vpop.eup %871  ;;  %v558_v49 = vmul.f32 %v870_v44, %v864_v37 }
 0x101   :  { %v874_v1 = vpop.eup %873  ;;  %889 = vrcp.f32 %v503_v45 }
 0x102   :  { %v876_v51 = vpop.eup %875  ;;  %891 = vtanh.f32 %v554_v29  ;;  %v557_v52 = vmul.f32 %v874_v1, %v872_v48 }
 0x103   :  { %v878_v55 = vpop.eup %877  ;;  %v506_v56 = vadd.f32 1.0, %v876_v51  ;;  %893 = vpow2.f32 %v708_v46 }
 0x104   :  { %895 = vtanh.f32 %v553_v32  ;;  %v880_v57 = vpop.eup %879 }
 0x105   :  { %897 = vrcp.f32 %v506_v56  ;;  %v882_v5 = vpop.eup %881  ;;  %v560_v59 = vmul.f32 %v880_v57, %v878_v55 }
 0x106   :  { %899 = vpow2.f32 %v707_v54  ;;  %v884_v60 = vpop.eup %883  ;;  %v511_v63 = vadd.f32 1.0, %v882_v5 }
 0x107   :  { %901 = vpow2.f32 %v710_v6  ;;  %v505_v62 = vadd.f32 1.0, %v884_v60  ;;  %v886_v35 = vpop.eup %885 }
 0x108   :  { %903 = vtanh.f32 %v560_v59  ;;  %v888_v3 = vpop.eup %887 }
 0x109   :  { %905 = vpow2.f32 %v709_v58 }
 0x10a   :  { %907 = vrcp.f32 %v505_v62 }
 0x10b   :  { %v890_v4 = vpop.eup %889  ;;  %909 = vrcp.f32 %v511_v63 }
 0x10c   :  { %v892_v8 = vpop.eup %891  ;;  %v559_v9 = vmul.f32 %v890_v4, %v888_v3 }
 0x10d   :  { %v894_v0 = vpop.eup %893 }
 0x10e   :  { %v896_v10 = vpop.eup %895  ;;  %911 = vtanh.f32 %v559_v9  ;;  %v508_v11 = vadd.f32 1.0, %v894_v0 }
 0x10f   :  { %v898_v13 = vpop.eup %897  ;;  %913 = vtanh.f32 %v556_v38 }
 0x110   :  { %v900_v14 = vpop.eup %899  ;;  %915 = vrcp.f32 %v508_v11  ;;  %v570_v15 = vmul.f32 %v898_v13, %v892_v8 }
 0x111   :  { %v902_v7 = vpop.eup %901  ;;  %917 = vtanh.f32 %v555_v42  ;;  %v507_v16 = vadd.f32 1.0, %v900_v14  ;;  %v582_v42 = vpop.permute.xlu0 %581 }
 0x112   :  { %v904_v17 = vpop.eup %903  ;;  %919 = vtanh.f32 %v558_v49  ;;  %v510_v18 = vadd.f32 1.0, %v902_v7 }
 0x113   :  { %v906_v19 = vpop.eup %905  ;;  %921 = vrcp.f32 %v507_v16  ;;  %v576_v20 = vmul.f32 %v904_v17, %v886_v35 }
 0x114   :  { %v908_v61 = vpop.eup %907  ;;  %923 = vrcp.f32 %v510_v18  ;;  %v509_v21 = vadd.f32 1.0, %v906_v19 }
 0x115   :  { %925 = vtanh.f32 %v557_v52  ;;  %v569_v22 = vmul.f32 %v908_v61, %v896_v10  ;;  %v910_v23 = vpop.eup %909 }
 0x116   :  { %927 = vrcp.f32 %v509_v21 }
 0x117   :  { %v813_v24 = vpack.c.bf16 %v570_v15, %v569_v22 }
 0x118   :  { %v912_v25 = vpop.eup %911 }
 0x119   :  { %v914_v26 = vpop.eup %913  ;;  %814 = vmatpush3.bf16.msra.mxu1 %v813_v24  ;;  %v575_v27 = vmul.f32 %v912_v25, %v910_v23 }
 0x11a   :  { %v916_v28 = vpop.eup %915  ;;  %815 = vmatprep.subr.bf16.mxu1 %v954_v53 }
 0x11b   :  { %v918_v29 = vpop.eup %917  ;;  %v572_v12 = vmul.f32 %v916_v28, %v914_v26  ;;  %v822_v30 = vpack.c.bf16 %v576_v20, %v575_v27 }
 0x11c   :  { %v920_v31 = vpop.eup %919 }
 0x11d   :  { %v922_v32 = vpop.eup %921 }
 0x11e   :  { %v924_v33 = vpop.eup %923  ;;  %v571_v34 = vmul.f32 %v922_v32, %v918_v29 }
 0x11f   :  { %v926_v36 = vpop.eup %925  ;;  %v574_v2 = vmul.f32 %v924_v33, %v920_v31 }
 0x120   :  { %v928_v37 = vpop.eup %927  ;;  %v816_v38 = vpack.c.bf16 %v572_v12, %v571_v34 }
 0x121   :  { %v573_v39 = vmul.f32 %v928_v37, %v926_v36 }
 0x122   :  { %817 = vmatpush3.bf16.msra.mxu1 %v816_v38 }
 0x123   :  { %818 = vmatprep.subr.bf16.mxu1 %v954_v53  ;;  %v819_v40 = vpack.c.bf16 %v574_v2, %v573_v39 }
 0x126   :  { %820 = vmatpush3.bf16.msra.mxu1 %v819_v40 }
 0x127   :  { %821 = vmatprep.subr.bf16.mxu1 %v954_v53 }
 0x12a   :  { %823 = vmatpush3.bf16.msra.mxu1 %v822_v30 }
 0x12d   :  { %806 = vmatmul.mubr.msk.f32.vlgmr.msra.gmra.mrb[10].mxu1 %vm584_vm2, %v577_v41 }
 0x200   :  { %v654_v43 = vpop.f32.mrb[10].mxu1 }
 0x201   :  { %v655_v44 = vadd.f32 %v654_v43, %v582_v42  ;;  %v807_v45 = vpop.f32.mrb[11].mxu1 }
 0x203   :  { %658 = vst [vmem:[#allocation2] sm:$0xff] %v655_v44 }
 0x204   :  { %940 = shalt.err (!%p937_p4)
}
 0x205   :  { %s941_s3 = scalar_lea.hbm %s1213_s5, 128 }
 0x206   :  { %p942_p5 = scmp.ne.s32.totalorder %s1213_s5, %s941_s3  ;;  %p945_p6 = scmp.lt.u32.totalorder %s941_s3, %s1213_s5 }
 0x208   :  { %p947_p7 = pnand %p945_p6, %p942_p5 }
 0x20a   :  { %950 = shalt.err (!%p947_p7)
}
 0x20b   :  { %668 = dma.vmem_to_hbm [thread:$0]  %s666_s16, 128, %s1213_s5, [#allocation3]  }
 0x20c   :  { %951 = dma.done.wait [#allocation3], 128  }
 0x20d   :  { %952 = vsyncadd [#allocation3], 4294967168 }
 0x20e   :  { %672 = vsyncpa [#allocation3], 1 }

</bundles_post_ra>
